<compile_context>
chip_gen: v7x
topology: tpu7x:2x2x1
jax: 0.10.0
libtpu: 0.0.40
codegen_flags: <defaults>
</compile_context>

<pallas_src>
import functools

import jax
import jax.numpy as jnp
from jax.experimental import pallas as pl
from jax.experimental.pallas import tpu as pltpu


def _min_value(dtype):
    """Identity element for max: -inf for floats (PyTorch's implicit pad), iinfo.min for ints."""
    if jnp.issubdtype(dtype, jnp.floating):
        return float("-inf")
    return int(jnp.iinfo(dtype).min)


def _make_sp_kernel(H, W, k, compute_dtype):
    """Stride-1 odd-k max pool on a (rows, H*W) tile; each row is an independent image plane."""
    p = k // 2
    HW = H * W
    fill_value = _min_value(compute_dtype)

    def kernel(x_ref, o_ref):
        x = x_ref[...].astype(compute_dtype)                  # (r_tile, H*W), vreg-resident
        shape = x.shape
        fill = jnp.full(shape, fill_value, compute_dtype)     # hoisted out of the tap loops
        pos = jax.lax.broadcasted_iota(jnp.int32, shape, 1)   # flat position within the image
        col = jax.lax.rem(pos, W)                             # column index within a row

        # Horizontal pass: max over column taps w-p .. w+p within the same image row.
        # pltpu.roll matches jnp.roll: roll(x, +d)[n] = x[n-d]; boundary taps are masked.
        # TODO(synk): for SPP-style k=9/13 a log-doubling chain would cut in-VMEM passes to
        # ~log2(k); for SP's default k=3 the linear chain below is already minimal.
        rowm = x
        for d in range(1, p + 1):
            left = pltpu.roll(x, shift=d % HW, axis=1)              # left[n]  = x[n - d]
            right = pltpu.roll(x, shift=(HW - d) % HW, axis=1)      # right[n] = x[n + d]
            rowm = jnp.maximum(rowm, jnp.where(col >= d, left, fill))
            rowm = jnp.maximum(rowm, jnp.where(col < W - d, right, fill))

        # Vertical pass: max over row taps h-p .. h+p (lane shifts by multiples of W).
        # Row masks need no division: row >= d  <=>  pos >= d*W (row-major flattening).
        out = rowm
        for d in range(1, p + 1):
            up = pltpu.roll(rowm, shift=(d * W) % HW, axis=1)        # up[n]   = rowm[n - d*W]
            down = pltpu.roll(rowm, shift=(HW - d * W) % HW, axis=1) # down[n] = rowm[n + d*W]
            out = jnp.maximum(out, jnp.where(pos >= d * W, up, fill))
            out = jnp.maximum(out, jnp.where(pos < (H - d) * W, down, fill))

        o_ref[...] = out.astype(o_ref.dtype)                   # single lane-dense store

    return kernel


def _choose_row_tile(R, HW, itemsize):
    """Largest row tile that (a) is a multiple of 8 dividing R (or the full R), (b) fits a
    v7x-safe VMEM budget with double buffering, (c) keeps ~8 grid steps for pipelining."""
    if R % 8 != 0:
        return R                                    # full-dim block (BlockSpec (8,128) rule)
    budget = 48 * 2**20                             # v7x-safe: 64 MiB physical, leave headroom
    buffers = 8                                     # 2x-buffered in + out, plus temp headroom
    cap = (budget // buffers) // max(1, HW * itemsize)
    cap = min(R, max(8, cap), max(8, R // 8))       # >= ~8 grid steps when R is large enough
    cap -= cap % 8
    cap = max(cap, 8)
    best = 8
    for t in range(8, cap + 1, 8):
        if R % t == 0:
            best = t
    return best


@functools.partial(jax.jit, static_argnames=("k", "s"))
def sp_maxpool_pallas(x_nchw, k=3, s=1):
    """SP.forward: MaxPool2d(k, stride=s, padding=k//2) on PyTorch-style NCHW input."""
    if s != 1:
        # TODO(synk): stride > 1 output subsampling not implemented; SP defaults to s=1.
        raise NotImplementedError("SP Pallas kernel only supports stride=1")
    if k % 2 != 1:
        raise NotImplementedError("SP Pallas kernel only supports odd kernel sizes")

    B, C, H, W = x_nchw.shape
    HW = H * W
    R = B * C
    dtype = x_nchw.dtype
    itemsize = jnp.dtype(dtype).itemsize

    # bf16/f16: keep HBM traffic narrow, run the in-VMEM max chain in f32 (v5e VALU).
    if jnp.issubdtype(dtype, jnp.floating) and itemsize < 4:
        compute_dtype = jnp.float32
    else:
        compute_dtype = dtype

    # Free, layout-preserving view (no HBM traffic): (B, C, H, W) -> (B*C, H*W).
    x2d = x_nchw.reshape(R, HW)

    r_tile = _choose_row_tile(R, HW, itemsize)
    grid = (R // r_tile,)

    tile_bytes = r_tile * HW * itemsize
    vmem_limit = int(min(48 * 2**20, max(32 * 2**20, 8 * tile_bytes)))

    out2d = pl.pallas_call(
        _make_sp_kernel(H, W, k, compute_dtype),
        out_shape=jax.ShapeDtypeStruct((R, HW), dtype),
        grid=grid,
        in_specs=[pl.BlockSpec((r_tile, HW), lambda i: (i, 0))],
        out_specs=pl.BlockSpec((r_tile, HW), lambda i: (i, 0)),
        compiler_params=pltpu.CompilerParams(
            dimension_semantics=("parallel",),
            vmem_limit_bytes=vmem_limit),
        cost_estimate=pl.CostEstimate(
            flops=2 * (k - 1) * B * C * H * W,        # separable: (k-1) maxima per axis
            transcendentals=0,
            bytes_accessed=2 * B * C * H * W * itemsize),
    )(x2d)
    return out2d.reshape(B, C, H, W)


def sp_maxpool_ref(x_nchw, k=3, s=1):
    """Pure-JAX reference with the same semantics as nn.MaxPool2d(k, s, padding=k//2)."""
    p = k // 2
    init = jnp.array(_min_value(x_nchw.dtype), x_nchw.dtype)
    return jax.lax.reduce_window(
        x_nchw, init, jax.lax.max,
        window_dimensions=(1, 1, k, k),
        window_strides=(1, 1, s, s),
        padding=((0, 0), (0, 0), (p, p), (p, p)))


if __name__ == "__main__":
    key = jax.random.PRNGKey(0)
    B, C, H, W = 2, 4, 16, 16
    x = jax.random.normal(key, (B, C, H, W), jnp.float32)   # PyTorch NCHW input

    out = sp_maxpool_pallas(x, k=3, s=1)
    out = jax.block_until_ready(out)

    ref = sp_maxpool_ref(x, k=3, s=1)
    assert out.shape == (B, C, H, W), out.shape
    assert jnp.allclose(out, ref), f"max abs err {jnp.max(jnp.abs(out - ref))}"

    print("KERNEL_OK")
</pallas_src>

<mosaic_0001>
module attributes {stable_mosaic.version = 11 : i64} {
  func.func @kernel(%arg0: i32, %arg1: memref<8x256xf32, #tpu.memory_space<vmem>>, %arg2: memref<8x256xf32, #tpu.memory_space<vmem>>) attributes {dimension_semantics = [#tpu.dimension_semantics<parallel>], iteration_bounds = array<i64: 1>, scalar_prefetch = 0 : i64, scratch_operands = 0 : i64, tpu.core_type = #tpu.core_type<tc>, window_params = [{transform_indices = @transform_0, window_bounds = array<i64: 8, 256>}, {transform_indices = @transform_1, window_bounds = array<i64: 8, 256>}]} {
    %c0 = arith.constant 0 : index
    %c0_0 = arith.constant 0 : index
    %0 = vector.load %arg1[%c0, %c0_0] : memref<8x256xf32, #tpu.memory_space<vmem>>, vector<8x256xf32>
    %cst = arith.constant 0xFF800000 : f32
    %1 = vector.broadcast %cst : f32 to vector<8x256xf32>
    %2 = tpu.iota {dimensions = array<i32: 1>} : vector<8x256xi32>
    %c16_i32 = arith.constant 16 : i32
    %3 = vector.broadcast %c16_i32 : i32 to vector<8x256xi32>
    %4 = arith.remsi %2, %3 : vector<8x256xi32>
    %c1_i32 = arith.constant 1 : i32
    %5 = tpu.dynamic_rotate %0 by %c1_i32 dim 1 : vector<8x256xf32>, i32 -> vector<8x256xf32>
    %c255_i32 = arith.constant 255 : i32
    %6 = tpu.dynamic_rotate %0 by %c255_i32 dim 1 : vector<8x256xf32>, i32 -> vector<8x256xf32>
    %c1_i32_1 = arith.constant 1 : i32
    %7 = vector.broadcast %c1_i32_1 : i32 to vector<8x256xi32>
    %8 = arith.cmpi sge, %4, %7 : vector<8x256xi32>
    %9 = arith.select %8, %5, %1 : vector<8x256xi1>, vector<8x256xf32>
    %10 = arith.maximumf %0, %9 : vector<8x256xf32>
    %c15_i32 = arith.constant 15 : i32
    %11 = vector.broadcast %c15_i32 : i32 to vector<8x256xi32>
    %12 = arith.cmpi slt, %4, %11 : vector<8x256xi32>
    %13 = arith.select %12, %6, %1 : vector<8x256xi1>, vector<8x256xf32>
    %14 = arith.maximumf %10, %13 : vector<8x256xf32>
    %c16_i32_2 = arith.constant 16 : i32
    %15 = tpu.dynamic_rotate %14 by %c16_i32_2 dim 1 : vector<8x256xf32>, i32 -> vector<8x256xf32>
    %c240_i32 = arith.constant 240 : i32
    %16 = tpu.dynamic_rotate %14 by %c240_i32 dim 1 : vector<8x256xf32>, i32 -> vector<8x256xf32>
    %c16_i32_3 = arith.constant 16 : i32
    %17 = vector.broadcast %c16_i32_3 : i32 to vector<8x256xi32>
    %18 = arith.cmpi sge, %2, %17 : vector<8x256xi32>
    %19 = arith.select %18, %15, %1 : vector<8x256xi1>, vector<8x256xf32>
    %20 = arith.maximumf %14, %19 : vector<8x256xf32>
    %c240_i32_4 = arith.constant 240 : i32
    %21 = vector.broadcast %c240_i32_4 : i32 to vector<8x256xi32>
    %22 = arith.cmpi slt, %2, %21 : vector<8x256xi32>
    %23 = arith.select %22, %16, %1 : vector<8x256xi1>, vector<8x256xf32>
    %24 = arith.maximumf %20, %23 : vector<8x256xf32>
    %c0_5 = arith.constant 0 : index
    %c0_6 = arith.constant 0 : index
    %25 = vector.load %arg2[%c0_5, %c0_6] : memref<8x256xf32, #tpu.memory_space<vmem>>, vector<8x256xf32>
    tpu.vector_store %arg2[%c0_5, %c0_6], %24 {strides = array<i32>} : memref<8x256xf32, #tpu.memory_space<vmem>>, vector<8x256xf32>,
    return
  }
  func.func @transform_0(%arg0: i32) -> (i32, i32) {
    %c0_i32 = arith.constant 0 : i32
    %c0_i32_0 = arith.constant 0 : i32
    return %arg0, %c0_i32 : i32, i32
  }
  func.func @transform_1(%arg0: i32) -> (i32, i32) {
    %c0_i32 = arith.constant 0 : i32
    %c0_i32_0 = arith.constant 0 : i32
    return %arg0, %c0_i32 : i32, i32
  }
}

</mosaic_0001>

<bundles_post_ra>
// kernel: sp_maxpool_pallas.1
= control target key start
LH: loop header
LB: loop body
LE: loop exit
PB: predicated region body
PF: predicated region fallthrough
CT: control target
= control target key end

     0   :  { %s89_s8 = smov 127   ;;  %s90_s9 = smov 1   ;;  %v10_v2 = vlaneseq  ;;  %s115_s0 = inlined_call_operand.vmem [shape: f32[8,256], index: 0, kind: input, shape index: {}]   ;;  %s116_s1 = inlined_call_operand.vmem [shape: f32[8,256], index: 1, kind: output, shape index: {}]  }
   0x1   :  { %v8_v0 = vld [vmem:[%s115_s0] sm:$0xff]  ;;  %v9_v1 = vld [vmem:[%s115_s0 + $0x8] sm:$0xff]  ;;  %s91_s0 = smov 16   ;;  %s92_s12 = smov 112  }
   0x2   :  { %34 = vrot.lane.b32.xlu1 %v8_v0, %s89_s8  ;;  %27 = vrot.lane.b32.xlu0 %v8_v0, %s90_s9  ;;  %v11_v3 = vand.u32 127, %v10_v2 }
   0x4   :  { %v12_v4 = vadd.s32 128, %v11_v3  ;;  %v17_v5 = vand.u32 15, %v11_v3  ;;  %vm38_vm0 = vcmp.lt.s32.totalorder %v11_v3, 127  ;;  %vm31_vm1 = vcmp.lt.s32.totalorder %v11_v3, 1 }
   0x5   :  { %vm57_vm6 = vcmp.lt.s32.totalorder %v11_v3, 16  ;;  %vm67_vm7 = vcmp.ge.s32.totalorder %v11_v3, 16  ;;  %vm64_vm8 = vcmp.lt.s32.totalorder %v11_v3, 112 }
   0x6   :  { %36 = vrot.lane.b32.xlu1 %v9_v1, %s89_s8  ;;  %29 = vrot.lane.b32.xlu0 %v9_v1, %s90_s9  ;;  %v24_v6 = vand.u32 15, %v12_v4  ;;  %vm41_vm2 = vcmp.ge.s32.totalorder %v17_v5, 1  ;;  %vm47_vm4 = vcmp.lt.s32.totalorder %v17_v5, 15  ;;  %vm74_vm9 = vcmp.lt.s32.totalorder %v12_v4, 240 }
   0x8   :  { %vm42_vm3 = vcmp.ge.s32.totalorder %v24_v6, 1  ;;  %vm48_vm5 = vcmp.lt.s32.totalorder %v24_v6, 15 }
  0x74   :  { %v35_v7 = vpop.permute.xlu1 %34  ;;  %v28_v8 = vpop.permute.xlu0 %27 }
  0x78   :  { %v37_v9 = vpop.permute.xlu1 %36  ;;  %v30_v10 = vpop.permute.xlu0 %29 }
  0x79   :  { %v39_v11 = vsel %vm38_vm0, %v35_v7, %v37_v9  ;;  %v40_v12 = vsel %vm38_vm0, %v37_v9, %v35_v7  ;;  %v32_v13 = vsel %vm31_vm1, %v28_v8, %v30_v10  ;;  %v33_v14 = vsel %vm31_vm1, %v30_v10, %v28_v8 }
  0x7a   :  { %v43_v15 = vsel %vm41_vm2, %v33_v14, -inf  ;;  %v44_v16 = vsel %vm42_vm3, %v32_v13, -inf  ;;  %v49_v19 = vsel %vm47_vm4, %v39_v11, -inf  ;;  %v50_v20 = vsel %vm48_vm5, %v40_v12, -inf }
  0x7b   :  { %v45_v17 = vmax.f32 %v8_v0, %v43_v15  ;;  %v46_v18 = vmax.f32 %v9_v1, %v44_v16 }
  0x7d   :  { %v51_v21 = vmax.f32 %v45_v17, %v49_v19  ;;  %v52_v22 = vmax.f32 %v46_v18, %v50_v20 }
  0x7f   :  { %53 = vrot.lane.b32.xlu0 %v51_v21, %s91_s0  ;;  %55 = vrot.lane.b32.xlu1 %v52_v22, %s91_s0 }
  0x83   :  { %60 = vrot.lane.b32.xlu0 %v51_v21, %s92_s12  ;;  %62 = vrot.lane.b32.xlu1 %v52_v22, %s92_s12 }
  0xf1   :  { %v54_v23 = vpop.permute.xlu0 %53  ;;  %v56_v24 = vpop.permute.xlu1 %55 }
  0xf2   :  { %v59_v25 = vsel %vm57_vm6, %v56_v24, %v54_v23  ;;  %v58_v26 = vsel %vm57_vm6, %v54_v23, %v56_v24 }
  0xf3   :  { %v69_v27 = vsel %vm67_vm7, %v59_v25, -inf  ;;  %v72_v31 = vmax.f32 %v52_v22, %v58_v26 }
  0xf4   :  { %v71_v28 = vmax.f32 %v51_v21, %v69_v27 }
  0xf5   :  { %v61_v29 = vpop.permute.xlu0 %60  ;;  %v63_v30 = vpop.permute.xlu1 %62 }
  0xf6   :  { %v65_v32 = vsel %vm64_vm8, %v61_v29, %v63_v30  ;;  %v66_v33 = vsel %vm64_vm8, %v63_v30, %v61_v29 }
  0xf7   :  { %v76_v34 = vsel %vm74_vm9, %v66_v33, -inf  ;;  %v77_v35 = vmax.f32 %v71_v28, %v65_v32 }
  0xf8   :  { %v78_v36 = vmax.f32 %v72_v31, %v76_v34 }
  0xf9   :  { %79 = vst [vmem:[%s116_s1] sm:$0xff] %v77_v35 }
  0xfa   :  { %80 = vst [vmem:[%s116_s1 + $0x8] sm:$0xff] %v78_v36 }

</bundles_post_ra>
